<compile_context>
chip_gen: v7x
topology: tpu7x:2x2x1
jax: 0.10.0
libtpu: 0.0.40
codegen_flags: <defaults>
</compile_context>

<pallas_src>
import functools

import jax
import jax.numpy as jnp
from jax import lax
from jax.experimental import pallas as pl
from jax.experimental.pallas import tpu as pltpu


# ----------------------------------------------------------------------------
# helpers
# ----------------------------------------------------------------------------
def _round_up(x, m):
    return ((x + m - 1) // m) * m


def _cparams(*sems):
    return pltpu.CompilerParams(dimension_semantics=sems,
                                vmem_limit_bytes=48 * 1024 * 1024)


def _pick_row_tile(rows, cap=32):
    """Output-row tile: full extent when small, else a multiple-of-8 divisor <= cap."""
    if rows <= cap:
        return rows
    for t in range(cap - cap % 8, 7, -8):
        if rows % t == 0:
            return t
    return rows  # full extent is always a legal block


def _tile_shape_1d(length, lane_target=1024, max_rows=256):
    """2-D tiling of a flat axis: returns (lane, rows_padded, row_tile).

    lane is a multiple of 128, row_tile a multiple of 8, block ~<= 1 MiB f32."""
    lane = min(lane_target, _round_up(length, 128))
    rows = (length + lane - 1) // lane
    rows8 = _round_up(rows, 8)
    tr = min(max_rows, rows8)
    rows_p = _round_up(rows8, tr)
    return lane, rows_p, tr


def _pad_cols(x2, total_cols, fill=None):
    """Pad the last axis of (B, L) to total_cols (fill=None -> zeros)."""
    pad = total_cols - x2.shape[1]
    if pad == 0:
        return x2
    if fill is None:
        tail = jnp.zeros((x2.shape[0], pad), x2.dtype)
    else:
        tail = jnp.broadcast_to(jnp.asarray(fill, x2.dtype).reshape(1, 1),
                                (x2.shape[0], pad))
    return jnp.concatenate([x2, tail], axis=1)


# ----------------------------------------------------------------------------
# Pallas kernel 1: direct (im2col-free) 3x3 / stride-2 / pad-1 conv + ReLU,
# with an optional fused 1x1 projection head (the LeReS-style decoder output).
#   - bf16 inputs/weights, f32 MXU accumulation
#   - grid = (batch, output-row tiles); per step one row tile of the stacked
#     phase image + one halo row live in VMEM; the 9 taps are static VMEM slices
#   - outputs are stored unpadded (bf16 features or the f32 1-channel head map)
# ----------------------------------------------------------------------------
def _make_conv_kernel(Cp, Cout, tho, Wo, relu, fuse_head):
    def kernel(*refs):
        if fuse_head:
            x_ref, halo_ref, w_ref, b_ref, hw_ref, hb_ref, o_ref, xa_ref = refs
        else:
            x_ref, halo_ref, w_ref, b_ref, o_ref, xa_ref = refs

        # Assemble the tho+1 phase rows needed by this output row-tile in VMEM.
        xa_ref[0:tho] = x_ref[0]
        xa_ref[tho:tho + 1] = halo_ref[0]

        m = tho * Wo
        acc = jnp.zeros((m, Cout), jnp.float32)
        for kh in range(3):
            dh = kh // 2
            for kw in range(3):
                dw = kw // 2
                p = (kh % 2) * 2 + (kw % 2)
                # Tap (kh, kw): contiguous slice of phase (kh%2, kw%2), shifted
                # by (dh, dw).  Pure VMEM traffic; no HBM duplication.
                xs = xa_ref[dh:dh + tho, dw:dw + Wo, p * Cp:(p + 1) * Cp]
                acc = acc + jnp.dot(xs.reshape(m, Cp), w_ref[3 * kh + kw],
                                    preferred_element_type=jnp.float32)
        acc = acc + b_ref[...]
        if relu:
            acc = jnp.maximum(acc, 0.0)
        y3 = acc.reshape(tho, Wo, Cout)
        if fuse_head:
            # Fused 1x1 decoder conv (Cout -> 1) as a VPU/XLU channel reduction;
            # the Cout-channel feature map never goes to HBM.
            d = jnp.sum(y3 * hw_ref[...], axis=-1) + hb_ref[...]
            o_ref[0] = d.astype(o_ref.dtype)
        else:
            o_ref[0] = y3.astype(o_ref.dtype)

    return kernel


def _phase_split_stack(x_nhwc):
    """(N,H,W,C) -> (N, H//2+1, W//2+1, 4*Cp): the 2x2 stride-2 phases of the
    1-padded image, channel-padded to Cp=round_up(C,8), stacked along channels.
    A single XLA pass; total bytes ~= the input (vs 9x for im2col)."""
    _, H, W, C = x_nhwc.shape
    assert H % 2 == 0 and W % 2 == 0
    Cp = _round_up(C, 8)
    xp = jnp.pad(x_nhwc, ((0, 0), (1, 1), (1, 1), (0, Cp - C)))
    phases = [xp[:, a::2, b::2, :] for a in range(2) for b in range(2)]
    return jnp.concatenate(phases, axis=-1), Cp


def conv3x3_s2(x_nhwc, w, b, *, relu=True, head_w=None, head_b=None):
    """3x3 / stride-2 / pad-1 conv on NHWC input (PyTorch NCHW weight layout).

    Returns (N, H//2, W//2, Cout) bf16, or -- when head_w/head_b are given --
    the fused 1x1-projection map (N, H//2, W//2) float32."""
    N, H, W, Cin = x_nhwc.shape
    Cout = w.shape[0]
    Ho, Wo = H // 2, W // 2
    fuse_head = head_w is not None

    ph, Cp = _phase_split_stack(x_nhwc.astype(jnp.bfloat16))
    Wq = Wo + 1  # phase images have Ho+1 rows, Wo+1 cols

    w9 = jnp.transpose(w, (2, 3, 1, 0)).reshape(9, Cin, Cout)
    w9 = jnp.pad(w9, ((0, 0), (0, Cp - Cin), (0, 0))).astype(jnp.bfloat16)
    b2 = b.reshape(1, Cout).astype(jnp.float32)

    tho = _pick_row_tile(Ho)
    grid = (N, Ho // tho)

    in_specs = [
        pl.BlockSpec((1, tho, Wq, 4 * Cp), lambda n, r: (n, r, 0, 0)),
        # one halo row (block size 1 -> block index == element row)
        pl.BlockSpec((1, 1, Wq, 4 * Cp), lambda n, r: (n, (r + 1) * tho, 0, 0)),
        pl.BlockSpec((9, Cp, Cout), lambda n, r: (0, 0, 0)),
        pl.BlockSpec((1, Cout), lambda n, r: (0, 0)),
    ]
    args = [ph, ph, w9, b2]
    if fuse_head:
        in_specs += [
            pl.BlockSpec((1, 1, Cout), lambda n, r: (0, 0, 0)),
            pl.BlockSpec((1, 1), lambda n, r: (0, 0)),
        ]
        args += [jnp.reshape(head_w, (1, 1, Cout)).astype(jnp.float32),
                 jnp.reshape(head_b, (1, 1)).astype(jnp.float32)]
        out_shape = jax.ShapeDtypeStruct((N, Ho, Wo), jnp.float32)
        out_spec = pl.BlockSpec((1, tho, Wo), lambda n, r: (n, r, 0))
    else:
        out_shape = jax.ShapeDtypeStruct((N, Ho, Wo, Cout), jnp.bfloat16)
        out_spec = pl.BlockSpec((1, tho, Wo, Cout), lambda n, r: (n, r, 0, 0))

    kernel = _make_conv_kernel(Cp, Cout, tho, Wo, relu, fuse_head)
    return pl.pallas_call(
        kernel,
        out_shape=out_shape,
        grid=grid,
        in_specs=in_specs,
        out_specs=out_spec,
        scratch_shapes=[pltpu.VMEM((tho + 1, Wq, 4 * Cp), jnp.bfloat16)],
        compiler_params=_cparams("parallel", "parallel"),
    )(*args)


# ----------------------------------------------------------------------------
# Pallas kernel 2: recover_scale_shift_depth
#   phase A: 2-D-tiled masked sums, (8, lane) VPU partials, closed-form 2x2
#            solve (single XLU reduce per sum) on the last tile
#   phase B: 2-D-tiled elementwise apply  pred * scale + shift
# ----------------------------------------------------------------------------
def _ss_sums_kernel(p_ref, g_ref, scale_ref, shift_ref,
                    spp, sp, sm, spg, sg, *, min_thr, max_thr, tr, lane):
    t = pl.program_id(1)

    @pl.when(t == 0)
    def _():
        spp[...] = jnp.zeros_like(spp)
        sp[...] = jnp.zeros_like(sp)
        sm[...] = jnp.zeros_like(sm)
        spg[...] = jnp.zeros_like(spg)
        sg[...] = jnp.zeros_like(sg)

    p = p_ref[0]                                     # (tr, lane)
    g = g_ref[0]
    msk = jnp.logical_and(g > min_thr, g < max_thr).astype(jnp.float32)
    pm = p * msk

    def fold(v):                                     # (tr, lane) -> (8, lane), VPU-only
        return jnp.sum(v.reshape(tr // 8, 8, lane), axis=0)

    spp[...] += fold(pm * p)
    sp[...] += fold(pm)
    sm[...] += fold(msk)
    spg[...] += fold(pm * g)
    sg[...] += fold(g * msk)

    @pl.when(t == pl.num_programs(1) - 1)
    def _():
        # A = [[sum p^2, sum p], [sum p, n]] + 1e-6*I ; B = [sum p*g, sum g]
        a11 = jnp.sum(spp[...], keepdims=True) + 1e-6
        a12 = jnp.sum(sp[...], keepdims=True)
        a22 = jnp.sum(sm[...], keepdims=True) + 1e-6
        b1 = jnp.sum(spg[...], keepdims=True)
        b2 = jnp.sum(sg[...], keepdims=True)
        inv_det = 1.0 / (a11 * a22 - a12 * a12)
        scale_ref[0] = (a22 * b1 - a12 * b2) * inv_det
        shift_ref[0] = (a11 * b2 - a12 * b1) * inv_det


def _ss_apply_kernel(scale_ref, shift_ref, p_ref, o_ref):
    o_ref[0] = p_ref[0] * scale_ref[0] + shift_ref[0]


def recover_scale_shift_depth_pallas(pred, gt, min_threshold=1e-8, max_threshold=1e8):
    b, c, h, w = pred.shape
    length = c * h * w
    p2 = pred.reshape(b, length).astype(jnp.float32)
    g2 = gt.reshape(b, length).astype(jnp.float32)

    lane, rows_p, tr = _tile_shape_1d(length)
    total = rows_p * lane
    # Pad gt with a value below min_threshold so padded elements are masked out
    # (finite, so 0*pad stays 0); padded pred values are irrelevant (mask == 0).
    p3 = _pad_cols(p2, total).reshape(b, rows_p, lane)
    g3 = _pad_cols(g2, total, fill=float(min_threshold) - 1.0).reshape(b, rows_p, lane)
    n_t = rows_p // tr

    scale, shift = pl.pallas_call(
        functools.partial(_ss_sums_kernel, min_thr=min_threshold,
                          max_thr=max_threshold, tr=tr, lane=lane),
        out_shape=(jax.ShapeDtypeStruct((b, 1, 1), jnp.float32),
                   jax.ShapeDtypeStruct((b, 1, 1), jnp.float32)),
        grid=(b, n_t),
        in_specs=[pl.BlockSpec((1, tr, lane), lambda i, t: (i, t, 0)),
                  pl.BlockSpec((1, tr, lane), lambda i, t: (i, t, 0))],
        out_specs=(pl.BlockSpec((1, 1, 1), lambda i, t: (i, 0, 0)),
                   pl.BlockSpec((1, 1, 1), lambda i, t: (i, 0, 0))),
        scratch_shapes=[pltpu.VMEM((8, lane), jnp.float32)] * 5,
        compiler_params=_cparams("parallel", "arbitrary"),
    )(p3, g3)

    out = pl.pallas_call(
        _ss_apply_kernel,
        out_shape=jax.ShapeDtypeStruct((b, rows_p, lane), jnp.float32),
        grid=(b, n_t),
        in_specs=[pl.BlockSpec((1, 1, 1), lambda i, t: (i, 0, 0)),
                  pl.BlockSpec((1, 1, 1), lambda i, t: (i, 0, 0)),
                  pl.BlockSpec((1, tr, lane), lambda i, t: (i, t, 0))],
        out_specs=pl.BlockSpec((1, tr, lane), lambda i, t: (i, t, 0)),
        compiler_params=_cparams("parallel", "parallel"),
    )(scale, shift, p3)
    return out.reshape(b, total)[:, :length].reshape(b, c, h, w)


# ----------------------------------------------------------------------------
# Pallas kernel 3: inference normalization  (pred - min + 1) / (max - min)
#   phase A: 2-D-tiled global min/max with (8, lane) VPU partials, run on the
#            PRE-upsample map (nearest repeat cannot change min/max)
#   phase B: 2-D-tiled elementwise apply on the full-resolution logit.
#   (No epsilon on (max - min): identical to the PyTorch reference semantics.)
# ----------------------------------------------------------------------------
def _minmax_kernel(x_ref, mn_ref, mx_ref, mn_s, mx_s, *, tr, lane):
    t = pl.program_id(0)

    @pl.when(t == 0)
    def _():
        mn_s[...] = jnp.full_like(mn_s, jnp.inf)
        mx_s[...] = jnp.full_like(mx_s, -jnp.inf)

    v = x_ref[...].reshape(tr // 8, 8, lane)
    mn_s[...] = jnp.minimum(mn_s[...], jnp.min(v, axis=0))
    mx_s[...] = jnp.maximum(mx_s[...], jnp.max(v, axis=0))

    @pl.when(t == pl.num_programs(0) - 1)
    def _():
        mn_ref[...] = jnp.min(mn_s[...], keepdims=True)
        mx_ref[...] = jnp.max(mx_s[...], keepdims=True)


def _norm_apply_kernel(mn_ref, mx_ref, x_ref, o_ref):
    mn = mn_ref[...]
    mx = mx_ref[...]
    o_ref[...] = (x_ref[...] - mn + 1.0) / (mx - mn)


def normalize_depth_pallas(pred_full, minmax_src=None):
    """(pred - min + 1) / (max - min).  min/max are taken from minmax_src (e.g.
    the pre-upsample map, 16x fewer bytes) when provided."""
    src = pred_full if minmax_src is None else minmax_src
    sflat = src.reshape(1, -1).astype(jnp.float32)
    ls = sflat.shape[1]
    lane_s, rows_s, tr_s = _tile_shape_1d(ls)
    # Pad with the first element: neutral for both min and max.
    s2 = _pad_cols(sflat, rows_s * lane_s, fill=sflat[:, :1]).reshape(rows_s, lane_s)

    mn, mx = pl.pallas_call(
        functools.partial(_minmax_kernel, tr=tr_s, lane=lane_s),
        out_shape=(jax.ShapeDtypeStruct((1, 1), jnp.float32),
                   jax.ShapeDtypeStruct((1, 1), jnp.float32)),
        grid=(rows_s // tr_s,),
        in_specs=[pl.BlockSpec((tr_s, lane_s), lambda t: (t, 0))],
        out_specs=(pl.BlockSpec((1, 1), lambda t: (0, 0)),
                   pl.BlockSpec((1, 1), lambda t: (0, 0))),
        scratch_shapes=[pltpu.VMEM((8, lane_s), jnp.float32)] * 2,
        compiler_params=_cparams("arbitrary"),
    )(s2)

    shape = pred_full.shape
    pflat = pred_full.reshape(1, -1).astype(jnp.float32)
    length = pflat.shape[1]
    lane, rows_p, tr = _tile_shape_1d(length)
    p2 = _pad_cols(pflat, rows_p * lane).reshape(rows_p, lane)

    out = pl.pallas_call(
        _norm_apply_kernel,
        out_shape=jax.ShapeDtypeStruct((rows_p, lane), jnp.float32),
        grid=(rows_p // tr,),
        in_specs=[pl.BlockSpec((1, 1), lambda t: (0, 0)),
                  pl.BlockSpec((1, 1), lambda t: (0, 0)),
                  pl.BlockSpec((tr, lane), lambda t: (t, 0))],
        out_specs=pl.BlockSpec((tr, lane), lambda t: (t, 0)),
        compiler_params=_cparams("parallel"),
    )(mn, mx, p2)
    return out.reshape(-1)[:length].reshape(shape)


# ----------------------------------------------------------------------------
# Synthetic DepthModel (deterministic weights) + RelDepthModel forward/inference
# ----------------------------------------------------------------------------
def init_params(key):
    ks = jax.random.split(key, 3)

    def conv_w(k, cout, cin, kh, kw):
        fan_in = float(cin * kh * kw)
        return jax.random.normal(k, (cout, cin, kh, kw), jnp.float32) / jnp.sqrt(fan_in)

    return {
        "enc1_w": conv_w(ks[0], 8, 3, 3, 3), "enc1_b": jnp.zeros((8,), jnp.float32),
        "enc2_w": conv_w(ks[1], 16, 8, 3, 3), "enc2_b": jnp.zeros((16,), jnp.float32),
        "dec_w": conv_w(ks[2], 1, 16, 1, 1), "dec_b": jnp.zeros((1,), jnp.float32),
    }


def depth_model_forward(params, x_nchw):
    """rgb (N,3,H,W) -> (logit (N,1,H,W) f32, pre-upsample map (N,H/4,W/4) f32)."""
    N, _, H, W = x_nchw.shape
    assert H % 4 == 0 and W % 4 == 0
    x = jnp.transpose(x_nchw, (0, 2, 3, 1))            # NHWC once, at the API boundary
    f1 = conv3x3_s2(x, params["enc1_w"], params["enc1_b"], relu=True)       # (N,H/2,W/2,8) bf16
    d = conv3x3_s2(f1, params["enc2_w"], params["enc2_b"], relu=True,       # fused 1x1 head:
                   head_w=params["dec_w"], head_b=params["dec_b"])          # (N,H/4,W/4) f32
    # nearest 4x upsample back to HxW (glue); equivalent to upsample-then-1x1-conv.
    logit = jnp.repeat(jnp.repeat(d, 4, axis=1), 4, axis=2)[:, None, :, :]
    return logit, d


def decoder_loss(pred_logit, data):
    gt_depth = data["depth"].astype(pred_logit.dtype)
    # pairwise-normal-regress path: scale/shift-invariant depth recovery (Pallas).
    # min_threshold=-1e-8 / max_threshold=10.1 match the original decoder_loss call.
    pred_ssinv = recover_scale_shift_depth_pallas(
        pred_logit, gt_depth, min_threshold=-1e-8, max_threshold=10.1)
    # TODO(synk): actual loss terms (PWNPlanesLoss etc.) are external modules.
    return {"pred_ssinv": pred_ssinv, "total_loss": jnp.float32(0.0)}


def rel_depth_model_forward(params, data, is_train=True, logit=None):
    # unsqueeze_tensors_in_dict, then the extra explicit depth unsqueeze
    # (matches the PyTorch code: 'depth' is unsqueezed twice: (H,W)->(1,1,H,W)).
    data = {k: (v[None, ...] if isinstance(v, jnp.ndarray) else v) for k, v in data.items()}
    if "depth" in data:
        data["depth"] = data["depth"][None, ...]
    d_small = None
    if logit is None:
        logit, d_small = depth_model_forward(params, data["rgb"].astype(jnp.float32))
    else:
        logit = logit[None, None, ...]
    if is_train:
        losses_dict = decoder_loss(logit, data)
    else:
        losses_dict = {"total_loss": jnp.float32(0.0)}
    return {"decoder": logit, "losses": losses_dict, "_pre_upsample": d_small}


def rel_depth_model_inference(params, data, logit=None):
    out = rel_depth_model_forward(params, data, is_train=False, logit=logit)
    pred_depth = out["decoder"]
    pred_depth_normalize = normalize_depth_pallas(pred_depth,
                                                  minmax_src=out["_pre_upsample"])
    return {"pred_depth": pred_depth,
            "pred_depth_normalize": pred_depth_normalize,
            "logit": pred_depth}


# ----------------------------------------------------------------------------
# pure-JAX reference for the scale/shift recovery (correctness cross-check)
# ----------------------------------------------------------------------------
def _recover_ss_ref(pred, gt, min_thr, max_thr):
    b = pred.shape[0]
    p = pred.reshape(b, -1).astype(jnp.float32)
    g = gt.reshape(b, -1).astype(jnp.float32)
    m = ((g > min_thr) & (g < max_thr)).astype(jnp.float32)
    a11 = jnp.sum(p * p * m, -1) + 1e-6
    a12 = jnp.sum(p * m, -1)
    a22 = jnp.sum(m, -1) + 1e-6
    b1 = jnp.sum(p * g * m, -1)
    b2 = jnp.sum(g * m, -1)
    det = a11 * a22 - a12 * a12
    scale = (a22 * b1 - a12 * b2) / det
    shift = (a11 * b2 - a12 * b1) / det
    return (p * scale[:, None] + shift[:, None]).reshape(pred.shape)


if __name__ == "__main__":
    key = jax.random.PRNGKey(0)
    k_rgb, k_depth, k_params = jax.random.split(key, 3)

    H = W = 16
    rgb = jax.random.normal(k_rgb, (3, H, W), jnp.float32)          # per-sample NCHW (no batch yet)
    depth = jax.random.uniform(k_depth, (H, W), jnp.float32, 0.1, 5.0)
    data = {"rgb": rgb, "depth": depth}

    params = init_params(k_params)

    out_train = rel_depth_model_forward(params, data, is_train=True)
    out_infer = rel_depth_model_inference(params, data)

    jax.block_until_ready(out_train["decoder"])
    jax.block_until_ready(out_train["losses"]["pred_ssinv"])
    jax.block_until_ready(out_infer["pred_depth_normalize"])

    assert out_train["decoder"].shape == (1, 1, H, W)
    assert out_train["losses"]["pred_ssinv"].shape == (1, 1, H, W)
    assert out_infer["pred_depth_normalize"].shape == (1, 1, H, W)

    # --- light correctness cross-checks against pure-JAX references ---
    x_nhwc = jnp.transpose(rgb[None], (0, 2, 3, 1))
    f1 = conv3x3_s2(x_nhwc, params["enc1_w"], params["enc1_b"], relu=True)
    ref_f1 = lax.conv_general_dilated(
        x_nhwc.astype(jnp.bfloat16),
        jnp.transpose(params["enc1_w"], (2, 3, 1, 0)).astype(jnp.bfloat16),
        window_strides=(2, 2), padding=((1, 1), (1, 1)),
        dimension_numbers=("NHWC", "HWIO", "NHWC"),
        preferred_element_type=jnp.float32)
    ref_f1 = jnp.maximum(ref_f1 + params["enc1_b"], 0.0)
    assert jnp.allclose(f1.astype(jnp.float32), ref_f1, rtol=5e-2, atol=5e-2)

    pred = out_train["decoder"]
    gt = depth[None, None, :, :].astype(jnp.float32)
    ref_ssinv = _recover_ss_ref(pred, gt, -1e-8, 10.1)
    assert jnp.allclose(out_train["losses"]["pred_ssinv"], ref_ssinv,
                        rtol=1e-2, atol=1e-3)

    ref_norm = (pred - pred.min() + 1.0) / (pred.max() - pred.min())
    assert jnp.allclose(out_infer["pred_depth_normalize"], ref_norm,
                        rtol=1e-5, atol=1e-5)

    print("KERNEL_OK")
</pallas_src>

<mosaic_0001>
module attributes {stable_mosaic.version = 11 : i64} {
  func.func @kernel(%arg0: i32, %arg1: i32, %arg2: memref<1x8x9x32xbf16, #tpu.memory_space<vmem>>, %arg3: memref<1x1x9x32xbf16, #tpu.memory_space<vmem>>, %arg4: memref<9x8x8xbf16, #tpu.memory_space<vmem>>, %arg5: memref<1x8xf32, #tpu.memory_space<vmem>>, %arg6: memref<1x8x8x8xbf16, #tpu.memory_space<vmem>>, %arg7: memref<9x9x32xbf16, #tpu.memory_space<vmem>>) attributes {dimension_semantics = [#tpu.dimension_semantics<parallel>, #tpu.dimension_semantics<parallel>], iteration_bounds = array<i64: 1, 1>, scalar_prefetch = 0 : i64, scratch_operands = 1 : i64, tpu.core_type = #tpu.core_type<tc>, window_params = [{transform_indices = @transform_0, window_bounds = array<i64: 1, 8, 9, 32>}, {transform_indices = @transform_1, window_bounds = array<i64: 1, 1, 9, 32>}, {pipeline_mode = #tpu.pipeline_mode<synchronous>, transform_indices = @transform_2, window_bounds = array<i64: 9, 8, 8>}, {pipeline_mode = #tpu.pipeline_mode<synchronous>, transform_indices = @transform_3, window_bounds = array<i64: 1, 8>}, {transform_indices = @transform_4, window_bounds = array<i64: 1, 8, 8, 8>}]} {
    %c0 = arith.constant 0 : index
    %c0_0 = arith.constant 0 : index
    %c0_1 = arith.constant 0 : index
    %c0_2 = arith.constant 0 : index
    %0 = vector.load %arg2[%c0, %c0_0, %c0_1, %c0_2] : memref<1x8x9x32xbf16, #tpu.memory_space<vmem>>, vector<1x8x9x32xbf16>
    %1 = vector.shape_cast %0 : vector<1x8x9x32xbf16> to vector<8x9x32xbf16>
    %c0_3 = arith.constant 0 : index
    %c0_4 = arith.constant 0 : index
    %c0_5 = arith.constant 0 : index
    %2 = vector.load %arg7[%c0_3, %c0_4, %c0_5] : memref<9x9x32xbf16, #tpu.memory_space<vmem>>, vector<8x9x32xbf16>
    tpu.vector_store %arg7[%c0_3, %c0_4, %c0_5], %1 {strides = array<i32>} : memref<9x9x32xbf16, #tpu.memory_space<vmem>>, vector<8x9x32xbf16>,
    %c0_6 = arith.constant 0 : index
    %c0_7 = arith.constant 0 : index
    %c0_8 = arith.constant 0 : index
    %c0_9 = arith.constant 0 : index
    %3 = vector.load %arg3[%c0_6, %c0_7, %c0_8, %c0_9] : memref<1x1x9x32xbf16, #tpu.memory_space<vmem>>, vector<1x1x9x32xbf16>
    %4 = vector.shape_cast %3 : vector<1x1x9x32xbf16> to vector<1x9x32xbf16>
    %c8 = arith.constant 8 : index
    %c0_10 = arith.constant 0 : index
    %c0_11 = arith.constant 0 : index
    %5 = vector.load %arg7[%c8, %c0_10, %c0_11] : memref<9x9x32xbf16, #tpu.memory_space<vmem>>, vector<1x9x32xbf16>
    tpu.vector_store %arg7[%c8, %c0_10, %c0_11], %4 {strides = array<i32>} : memref<9x9x32xbf16, #tpu.memory_space<vmem>>, vector<1x9x32xbf16>,
    %cst = arith.constant 0.000000e+00 : f32
    %6 = vector.broadcast %cst : f32 to vector<64x8xf32>
    %c0_12 = arith.constant 0 : index
    %c0_13 = arith.constant 0 : index
    %c0_14 = arith.constant 0 : index
    %7 = vector.load %arg7[%c0_12, %c0_13, %c0_14] : memref<9x9x32xbf16, #tpu.memory_space<vmem>>, vector<8x8x8xbf16>
    %8 = vector.shape_cast %7 : vector<8x8x8xbf16> to vector<64x8xbf16>
    %c0_15 = arith.constant 0 : index
    %c0_16 = arith.constant 0 : index
    %c0_17 = arith.constant 0 : index
    %9 = vector.load %arg4[%c0_15, %c0_16, %c0_17] : memref<9x8x8xbf16, #tpu.memory_space<vmem>>, vector<1x8x8xbf16>
    %10 = vector.shape_cast %9 : vector<1x8x8xbf16> to vector<8x8xbf16>
    %cst_18 = arith.constant dense<0.000000e+00> : vector<64x8xf32>
    %11 = tpu.matmul %8, %10, %cst_18 {dimension_numbers = #tpu.dot_dimension_numbers<[1], [0], [0], [1], [0, 0, 1, 1], [], []>} : vector<64x8xbf16>, vector<8x8xbf16>, vector<64x8xf32> -> vector<64x8xf32>
    %12 = arith.addf %6, %11 : vector<64x8xf32>
    %c0_19 = arith.constant 0 : index
    %c0_20 = arith.constant 0 : index
    %c8_21 = arith.constant 8 : index
    %13 = vector.load %arg7[%c0_19, %c0_20, %c8_21] : memref<9x9x32xbf16, #tpu.memory_space<vmem>>, vector<8x8x8xbf16>
    %14 = vector.shape_cast %13 : vector<8x8x8xbf16> to vector<64x8xbf16>
    %c1 = arith.constant 1 : index
    %c0_22 = arith.constant 0 : index
    %c0_23 = arith.constant 0 : index
    %15 = vector.load %arg4[%c1, %c0_22, %c0_23] : memref<9x8x8xbf16, #tpu.memory_space<vmem>>, vector<1x8x8xbf16>
    %16 = vector.shape_cast %15 : vector<1x8x8xbf16> to vector<8x8xbf16>
    %cst_24 = arith.constant dense<0.000000e+00> : vector<64x8xf32>
    %17 = tpu.matmul %14, %16, %cst_24 {dimension_numbers = #tpu.dot_dimension_numbers<[1], [0], [0], [1], [0, 0, 1, 1], [], []>} : vector<64x8xbf16>, vector<8x8xbf16>, vector<64x8xf32> -> vector<64x8xf32>
    %18 = arith.addf %12, %17 : vector<64x8xf32>
    %c0_25 = arith.constant 0 : index
    %c1_26 = arith.constant 1 : index
    %c0_27 = arith.constant 0 : index
    %19 = vector.load %arg7[%c0_25, %c1_26, %c0_27] : memref<9x9x32xbf16, #tpu.memory_space<vmem>>, vector<8x8x8xbf16>
    %20 = vector.shape_cast %19 : vector<8x8x8xbf16> to vector<64x8xbf16>
    %c2 = arith.constant 2 : index
    %c0_28 = arith.constant 0 : index
    %c0_29 = arith.constant 0 : index
    %21 = vector.load %arg4[%c2, %c0_28, %c0_29] : memref<9x8x8xbf16, #tpu.memory_space<vmem>>, vector<1x8x8xbf16>
    %22 = vector.shape_cast %21 : vector<1x8x8xbf16> to vector<8x8xbf16>
    %cst_30 = arith.constant dense<0.000000e+00> : vector<64x8xf32>
    %23 = tpu.matmul %20, %22, %cst_30 {dimension_numbers = #tpu.dot_dimension_numbers<[1], [0], [0], [1], [0, 0, 1, 1], [], []>} : vector<64x8xbf16>, vector<8x8xbf16>, vector<64x8xf32> -> vector<64x8xf32>
    %24 = arith.addf %18, %23 : vector<64x8xf32>
    %c0_31 = arith.constant 0 : index
    %c0_32 = arith.constant 0 : index
    %c16 = arith.constant 16 : index
    %25 = vector.load %arg7[%c0_31, %c0_32, %c16] : memref<9x9x32xbf16, #tpu.memory_space<vmem>>, vector<8x8x8xbf16>
    %26 = vector.shape_cast %25 : vector<8x8x8xbf16> to vector<64x8xbf16>
    %c3 = arith.constant 3 : index
    %c0_33 = arith.constant 0 : index
    %c0_34 = arith.constant 0 : index
    %27 = vector.load %arg4[%c3, %c0_33, %c0_34] : memref<9x8x8xbf16, #tpu.memory_space<vmem>>, vector<1x8x8xbf16>
    %28 = vector.shape_cast %27 : vector<1x8x8xbf16> to vector<8x8xbf16>
    %cst_35 = arith.constant dense<0.000000e+00> : vector<64x8xf32>
    %29 = tpu.matmul %26, %28, %cst_35 {dimension_numbers = #tpu.dot_dimension_numbers<[1], [0], [0], [1], [0, 0, 1, 1], [], []>} : vector<64x8xbf16>, vector<8x8xbf16>, vector<64x8xf32> -> vector<64x8xf32>
    %30 = arith.addf %24, %29 : vector<64x8xf32>
    %c0_36 = arith.constant 0 : index
    %c0_37 = arith.constant 0 : index
    %c24 = arith.constant 24 : index
    %31 = vector.load %arg7[%c0_36, %c0_37, %c24] : memref<9x9x32xbf16, #tpu.memory_space<vmem>>, vector<8x8x8xbf16>
    %32 = vector.shape_cast %31 : vector<8x8x8xbf16> to vector<64x8xbf16>
    %c4 = arith.constant 4 : index
    %c0_38 = arith.constant 0 : index
    %c0_39 = arith.constant 0 : index
    %33 = vector.load %arg4[%c4, %c0_38, %c0_39] : memref<9x8x8xbf16, #tpu.memory_space<vmem>>, vector<1x8x8xbf16>
    %34 = vector.shape_cast %33 : vector<1x8x8xbf16> to vector<8x8xbf16>
    %cst_40 = arith.constant dense<0.000000e+00> : vector<64x8xf32>
    %35 = tpu.matmul %32, %34, %cst_40 {dimension_numbers = #tpu.dot_dimension_numbers<[1], [0], [0], [1], [0, 0, 1, 1], [], []>} : vector<64x8xbf16>, vector<8x8xbf16>, vector<64x8xf32> -> vector<64x8xf32>
    %36 = arith.addf %30, %35 : vector<64x8xf32>
    %c0_41 = arith.constant 0 : index
    %c1_42 = arith.constant 1 : index
    %c16_43 = arith.constant 16 : index
    %37 = vector.load %arg7[%c0_41, %c1_42, %c16_43] : memref<9x9x32xbf16, #tpu.memory_space<vmem>>, vector<8x8x8xbf16>
    %38 = vector.shape_cast %37 : vector<8x8x8xbf16> to vector<64x8xbf16>
    %c5 = arith.constant 5 : index
    %c0_44 = arith.constant 0 : index
    %c0_45 = arith.constant 0 : index
    %39 = vector.load %arg4[%c5, %c0_44, %c0_45] : memref<9x8x8xbf16, #tpu.memory_space<vmem>>, vector<1x8x8xbf16>
    %40 = vector.shape_cast %39 : vector<1x8x8xbf16> to vector<8x8xbf16>
    %cst_46 = arith.constant dense<0.000000e+00> : vector<64x8xf32>
    %41 = tpu.matmul %38, %40, %cst_46 {dimension_numbers = #tpu.dot_dimension_numbers<[1], [0], [0], [1], [0, 0, 1, 1], [], []>} : vector<64x8xbf16>, vector<8x8xbf16>, vector<64x8xf32> -> vector<64x8xf32>
    %42 = arith.addf %36, %41 : vector<64x8xf32>
    %c1_47 = arith.constant 1 : index
    %c0_48 = arith.constant 0 : index
    %c0_49 = arith.constant 0 : index
    %43 = vector.load %arg7[%c1_47, %c0_48, %c0_49] : memref<9x9x32xbf16, #tpu.memory_space<vmem>>, vector<8x8x8xbf16>
    %44 = vector.shape_cast %43 : vector<8x8x8xbf16> to vector<64x8xbf16>
    %c6 = arith.constant 6 : index
    %c0_50 = arith.constant 0 : index
    %c0_51 = arith.constant 0 : index
    %45 = vector.load %arg4[%c6, %c0_50, %c0_51] : memref<9x8x8xbf16, #tpu.memory_space<vmem>>, vector<1x8x8xbf16>
    %46 = vector.shape_cast %45 : vector<1x8x8xbf16> to vector<8x8xbf16>
    %cst_52 = arith.constant dense<0.000000e+00> : vector<64x8xf32>
    %47 = tpu.matmul %44, %46, %cst_52 {dimension_numbers = #tpu.dot_dimension_numbers<[1], [0], [0], [1], [0, 0, 1, 1], [], []>} : vector<64x8xbf16>, vector<8x8xbf16>, vector<64x8xf32> -> vector<64x8xf32>
    %48 = arith.addf %42, %47 : vector<64x8xf32>
    %c1_53 = arith.constant 1 : index
    %c0_54 = arith.constant 0 : index
    %c8_55 = arith.constant 8 : index
    %49 = vector.load %arg7[%c1_53, %c0_54, %c8_55] : memref<9x9x32xbf16, #tpu.memory_space<vmem>>, vector<8x8x8xbf16>
    %50 = vector.shape_cast %49 : vector<8x8x8xbf16> to vector<64x8xbf16>
    %c7 = arith.constant 7 : index
    %c0_56 = arith.constant 0 : index
    %c0_57 = arith.constant 0 : index
    %51 = vector.load %arg4[%c7, %c0_56, %c0_57] : memref<9x8x8xbf16, #tpu.memory_space<vmem>>, vector<1x8x8xbf16>
    %52 = vector.shape_cast %51 : vector<1x8x8xbf16> to vector<8x8xbf16>
    %cst_58 = arith.constant dense<0.000000e+00> : vector<64x8xf32>
    %53 = tpu.matmul %50, %52, %cst_58 {dimension_numbers = #tpu.dot_dimension_numbers<[1], [0], [0], [1], [0, 0, 1, 1], [], []>} : vector<64x8xbf16>, vector<8x8xbf16>, vector<64x8xf32> -> vector<64x8xf32>
    %54 = arith.addf %48, %53 : vector<64x8xf32>
    %c1_59 = arith.constant 1 : index
    %c1_60 = arith.constant 1 : index
    %c0_61 = arith.constant 0 : index
    %55 = vector.load %arg7[%c1_59, %c1_60, %c0_61] : memref<9x9x32xbf16, #tpu.memory_space<vmem>>, vector<8x8x8xbf16>
    %56 = vector.shape_cast %55 : vector<8x8x8xbf16> to vector<64x8xbf16>
    %c8_62 = arith.constant 8 : index
    %c0_63 = arith.constant 0 : index
    %c0_64 = arith.constant 0 : index
    %57 = vector.load %arg4[%c8_62, %c0_63, %c0_64] : memref<9x8x8xbf16, #tpu.memory_space<vmem>>, vector<1x8x8xbf16>
    %58 = vector.shape_cast %57 : vector<1x8x8xbf16> to vector<8x8xbf16>
    %cst_65 = arith.constant dense<0.000000e+00> : vector<64x8xf32>
    %59 = tpu.matmul %56, %58, %cst_65 {dimension_numbers = #tpu.dot_dimension_numbers<[1], [0], [0], [1], [0, 0, 1, 1], [], []>} : vector<64x8xbf16>, vector<8x8xbf16>, vector<64x8xf32> -> vector<64x8xf32>
    %60 = arith.addf %54, %59 : vector<64x8xf32>
    %c0_66 = arith.constant 0 : index
    %c0_67 = arith.constant 0 : index
    %61 = vector.load %arg5[%c0_66, %c0_67] : memref<1x8xf32, #tpu.memory_space<vmem>>, vector<1x8xf32>
    %62 = vector.broadcast %61 : vector<1x8xf32> to vector<64x8xf32>
    %63 = arith.addf %60, %62 : vector<64x8xf32>
    %cst_68 = arith.constant 0.000000e+00 : f32
    %64 = vector.broadcast %cst_68 : f32 to vector<64x8xf32>
    %65 = arith.maximumf %63, %64 : vector<64x8xf32>
    %66 = vector.shape_cast %65 : vector<64x8xf32> to vector<8x8x8xf32>
    %67 = arith.truncf %66 : vector<8x8x8xf32> to vector<8x8x8xbf16>
    %c0_69 = arith.constant 0 : index
    %c0_70 = arith.constant 0 : index
    %c0_71 = arith.constant 0 : index
    %c0_72 = arith.constant 0 : index
    %68 = vector.load %arg6[%c0_69, %c0_70, %c0_71, %c0_72] : memref<1x8x8x8xbf16, #tpu.memory_space<vmem>>, vector<1x8x8x8xbf16>
    %69 = vector.shape_cast %68 : vector<1x8x8x8xbf16> to vector<8x8x8xbf16>
    %70 = vector.shape_cast %67 : vector<8x8x8xbf16> to vector<1x8x8x8xbf16>
    tpu.vector_store %arg6[%c0_69, %c0_70, %c0_71, %c0_72], %70 {strides = array<i32>} : memref<1x8x8x8xbf16, #tpu.memory_space<vmem>>, vector<1x8x8x8xbf16>,
    return
  }
  func.func @transform_0(%arg0: i32, %arg1: i32) -> (i32, i32, i32, i32) {
    %c0_i32 = arith.constant 0 : i32
    %c0_i32_0 = arith.constant 0 : i32
    %c0_i32_1 = arith.constant 0 : i32
    return %arg0, %arg1, %c0_i32, %c0_i32_0 : i32, i32, i32, i32
  }
  func.func @transform_1(%arg0: i32, %arg1: i32) -> (i32, i32, i32, i32) {
    %c1_i32 = arith.constant 1 : i32
    %0 = arith.addi %arg1, %c1_i32 : i32
    %c8_i32 = arith.constant 8 : i32
    %1 = arith.muli %0, %c8_i32 : i32
    %c0_i32 = arith.constant 0 : i32
    %c0_i32_0 = arith.constant 0 : i32
    %c0_i32_1 = arith.constant 0 : i32
    return %arg0, %1, %c0_i32, %c0_i32_0 : i32, i32, i32, i32
  }
  func.func @transform_2(%arg0: i32, %arg1: i32) -> (i32, i32, i32) {
    %c0_i32 = arith.constant 0 : i32
    %c0_i32_0 = arith.constant 0 : i32
    %c0_i32_1 = arith.constant 0 : i32
    %c0_i32_2 = arith.constant 0 : i32
    return %c0_i32, %c0_i32_0, %c0_i32_1 : i32, i32, i32
  }
  func.func @transform_3(%arg0: i32, %arg1: i32) -> (i32, i32) {
    %c0_i32 = arith.constant 0 : i32
    %c0_i32_0 = arith.constant 0 : i32
    %c0_i32_1 = arith.constant 0 : i32
    return %c0_i32, %c0_i32_0 : i32, i32
  }
  func.func @transform_4(%arg0: i32, %arg1: i32) -> (i32, i32, i32, i32) {
    %c0_i32 = arith.constant 0 : i32
    %c0_i32_0 = arith.constant 0 : i32
    %c0_i32_1 = arith.constant 0 : i32
    return %arg0, %arg1, %c0_i32, %c0_i32_0 : i32, i32, i32, i32
  }
}

</mosaic_0001>

<bundles_post_ra>
// kernel: tpu_custom_call.1
= control target key start
LH: loop header
LB: loop body
LE: loop exit
PB: predicated region body
PF: predicated region fallthrough
CT: control target
= control target key end

     0   :  { %9 = vsyncpa [#allocation4], 0  ;;  %s2038_s0 = inlined_call_operand.hbm [shape: bf16[1,9,9,32], index: 0, kind: input, shape index: {}]   ;;  %s2039_s1 = inlined_call_operand.hbm [shape: bf16[1,9,9,32], index: 1, kind: input, shape index: {}]   ;;  %s2040_s2 = inlined_call_operand.vmem [shape: bf16[9,8,8], index: 2, kind: input, shape index: {}]   ;;  %s2041_s3 = inlined_call_operand.vmem [shape: f32[1,8], index: 3, kind: input, shape index: {}]   ;;  %s2042_s4 = inlined_call_operand.hbm [shape: bf16[1,8,8,8], index: 4, kind: output, shape index: {}]  }
   0x1   :  { %10 = vsyncpa [#allocation7], 0 }
   0x2   :  { %11 = vsyncpa [#allocation5], 0  ;;  %s1710_s15 = smov [#allocation3]   ;;  %s1635_s19 = scalar_lea.hbm %s2038_s0, 1024 }
   0x3   :  { %s17_s16 = sshll.u32 %s1710_s15, 4  ;;  %p1636_p0 = scmp.ne.s32.totalorder %s2038_s0, %s1635_s19  ;;  %s18_s16 = int_to_ptr.vmem [resolvable:$true] %s17_s16 }
   0x4   :  { %s1637_s24 = scalar_lea.hbm %s2038_s0, 1152  ;;  %p1639_p2 = scmp.lt.u32.totalorder %s1635_s19, %s2038_s0 }
   0x5   :  { %p1638_p1 = scmp.lt.u32.totalorder %s1637_s24, %s1635_s19 }
   0x7   :  { %p1640_p3 = por %p1639_p2, %p1638_p1 }
   0x9   :  { %p1641_p4 = pnand %p1640_p3, %p1636_p0 }
   0xb   :  { %1644 = shalt.err (!%p1641_p4)
}
   0xc   :  { %s1645_s27 = scalar_lea.vmem %s18_s16, 1024  ;;  %p1650_p6 = scmp.lt.s32.totalorder %s18_s16, %s18_s16 }
   0xd   :  { %p1646_p5 = scmp.ne.s32.totalorder %s18_s16, %s1645_s27  ;;  %p1651_p7 = scmp.lt.s32.totalorder %s1645_s27, %s1645_s27 }
   0xf   :  { %p1652_p8 = por %p1651_p7, %p1650_p6 }
  0x11   :  { %p1653_p9 = pnand %p1652_p8, %p1646_p5 }
  0x13   :  { %1656 = shalt.err (!%p1653_p9)
}
  0x14   :  { %s1711_s28 = smov 64   ;;  %s1712_s29 = smov 4  }
  0x15   :  { %23 = dma.hbm_to_vmem [thread:$0]  %s2038_s0, 1024, %s18_s16, [#allocation4], %s1711_s28, %s1711_s28, %s1712_s29  }
  0x16   :  { %s1346_s8 = scalar_lea.hbm %s2039_s1, 1024  ;;  %s1713_s9 = smov [#allocation6]  }
  0x17   :  { %s34_s10 = sshll.u32 %s1713_s9, 4  ;;  %s1681_s13 = scalar_lea.hbm %s2039_s1, 1152  ;;  %s35_s10 = int_to_ptr.vmem [resolvable:$true] %s34_s10 }
  0x18   :  { %p1658_p10 = scmp.ne.s32.totalorder %s1346_s8, %s1681_s13  ;;  %p1660_p11 = scmp.lt.u32.totalorder %s1346_s8, %s2039_s1 }
  0x19   :  { %p1661_p12 = scmp.lt.u32.totalorder %s1681_s13, %s1681_s13  ;;  %p1663_p0 = scmp.lt.u32.totalorder %s1681_s13, %s1346_s8 }
  0x1b   :  { %p1662_p13 = por %p1661_p12, %p1660_p11 }
  0x1d   :  { %p1664_p1 = por %p1663_p0, %p1662_p13 }
  0x1f   :  { %p1665_p2 = pnand %p1664_p1, %p1658_p10 }
  0x21   :  { %1668 = shalt.err (!%p1665_p2)
}
  0x22   :  { %s1669_s0 = scalar_lea.vmem %s35_s10, 128  ;;  %p1674_p4 = scmp.lt.s32.totalorder %s35_s10, %s35_s10 }
  0x23   :  { %p1670_p3 = scmp.ne.s32.totalorder %s35_s10, %s1669_s0  ;;  %p1675_p5 = scmp.lt.s32.totalorder %s1669_s0, %s1669_s0 }
  0x25   :  { %p1676_p6 = por %p1675_p5, %p1674_p4 }
  0x27   :  { %p1677_p7 = pnand %p1676_p6, %p1670_p3 }
  0x29   :  { %1680 = shalt.err (!%p1677_p7)
}
  0x2a   :  { %40 = dma.hbm_to_vmem [thread:$0]  %s1346_s8, 128, %s35_s10, [#allocation7], %s1711_s28, %s1711_s28, %s1712_s29  }
  0x2b   :  { %1704 = dma.done.wait [#allocation4], 1024  }
  0x2c   :  { %1705 = vsyncadd [#allocation4], 4294966272 }
  0x2d   :  { %1706 = dma.done.wait [#allocation7], 128  }
  0x2e   :  { %1707 = vsyncadd [#allocation7], 4294967168  ;;  %vm72_vm0 = vcmask 253952   ;;  %vm73_vm1 = vsmask.f32 256  ;;  %vm70_vm2 = vcmask 257024  }
  0x2f   :  { %vm1773_vm3 = vmand %vm72_vm0, %vm73_vm1  ;;  %v54_v1 = vld [vmem:[#allocation3] sm:$0xf]  ;;  %v56_v2 = vld [vmem:[#allocation3 + $0x8] sm:$0xf]  ;;  %s1714_s1 = smov 120   ;;  %s1715_s16 = smov 104  }
  0x30   :  { %v58_v3 = vld [vmem:[#allocation3 + $0x10] sm:$0xf]  ;;  %71 = vst.msk [vmem:[#allocation2] sm:$0xf] %vm70_vm2, %v54_v1  ;;  %78 = vst.msk [vmem:[#allocation2 + $0x8] sm:$0xf] %vm70_vm2, %v56_v2 }
  0x31   :  { %v60_v4 = vld [vmem:[#allocation3 + $0x18] sm:$0xf]  ;;  %82 = vst.msk [vmem:[#allocation2 + $0x10] sm:$0xf] %vm70_vm2, %v58_v3  ;;  %v62_v5 = vld [vmem:[#allocation3 + $0x20] sm:$0xf] }
  0x32   :  { %v64_v6 = vld [vmem:[#allocation3 + $0x28] sm:$0xf]  ;;  %86 = vst.msk [vmem:[#allocation2 + $0x18] sm:$0xf] %vm70_vm2, %v60_v4  ;;  %90 = vst.msk [vmem:[#allocation2 + $0x20] sm:$0xf] %vm70_vm2, %v62_v5 }
  0x33   :  { %94 = vst.msk [vmem:[#allocation2 + $0x28] sm:$0xf] %vm70_vm2, %v64_v6  ;;  %v66_v7 = vld [vmem:[#allocation3 + $0x30] sm:$0xf]  ;;  %v68_v8 = vld [vmem:[#allocation3 + $0x38] sm:$0xf] }
  0x34   :  { %v55_v9 = vld [vmem:[#allocation3 + $0x4] sm:$0x1]  ;;  %98 = vst.msk [vmem:[#allocation2 + $0x30] sm:$0xf] %vm70_vm2, %v66_v7  ;;  %102 = vst.msk [vmem:[#allocation2 + $0x38] sm:$0xf] %vm70_vm2, %v68_v8 }
  0x35   :  { %v57_v10 = vld [vmem:[#allocation3 + $0xc] sm:$0x1]  ;;  %v75_v11 = vld [vmem:[#allocation2 + $0x4] sm:$0x1]  ;;  %v79_v12 = vld [vmem:[#allocation2 + $0xc] sm:$0x1] }
  0x36   :  { %v76_v13 = vsel %vm1773_vm3, %v55_v9, %v75_v11  ;;  %v80_v14 = vsel %vm1773_vm3, %v57_v10, %v79_v12  ;;  %v59_v15 = vld [vmem:[#allocation3 + $0x14] sm:$0x1]  ;;  %v61_v16 = vld [vmem:[#allocation3 + $0x1c] sm:$0x1]  ;;  %v83_v17 = vld [vmem:[#allocation2 + $0x14] sm:$0x1] }
  0x37   :  { %77 = vst [vmem:[#allocation2 + $0x4] sm:$0x1] %v76_v13  ;;  %81 = vst [vmem:[#allocation2 + $0xc] sm:$0x1] %v80_v14  ;;  %v84_v18 = vsel %vm1773_vm3, %v59_v15, %v83_v17  ;;  %v87_v19 = vld [vmem:[#allocation2 + $0x1c] sm:$0x1] }
  0x38   :  { %v63_v20 = vld [vmem:[#allocation3 + $0x24] sm:$0x1]  ;;  %v65_v21 = vld [vmem:[#allocation3 + $0x2c] sm:$0x1]  ;;  %85 = vst [vmem:[#allocation2 + $0x14] sm:$0x1] %v84_v18  ;;  %v88_v22 = vsel %vm1773_vm3, %v61_v16, %v87_v19 }
  0x39   :  { %v91_v23 = vld [vmem:[#allocation2 + $0x24] sm:$0x1]  ;;  %v95_v24 = vld [vmem:[#allocation2 + $0x2c] sm:$0x1]  ;;  %v67_v25 = vld [vmem:[#allocation3 + $0x34] sm:$0x1] }
  0x3a   :  { %89 = vst [vmem:[#allocation2 + $0x1c] sm:$0x1] %v88_v22  ;;  %v92_v26 = vsel %vm1773_vm3, %v63_v20, %v91_v23  ;;  %v96_v27 = vsel %vm1773_vm3, %v65_v21, %v95_v24  ;;  %v69_v28 = vld [vmem:[#allocation3 + $0x3c] sm:$0x1]  ;;  %v99_v29 = vld [vmem:[#allocation2 + $0x34] sm:$0x1] }
  0x3b   :  { %v103_v30 = vld [vmem:[#allocation2 + $0x3c] sm:$0x1]  ;;  %v1797_v31 = vld [vmem:[#allocation2] ss:$8 sps:$4 sm:$0xff]   ;;  %93 = vst [vmem:[#allocation2 + $0x24] sm:$0x1] %v92_v26  ;;  %v100_v32 = vsel %vm1773_vm3, %v67_v25, %v99_v29 }
  0x3c   :  { %97 = vst [vmem:[#allocation2 + $0x2c] sm:$0x1] %v96_v27  ;;  %v104_v33 = vsel %vm1773_vm3, %v69_v28, %v103_v30  ;;  %v1803_v34 = vld [vmem:[#allocation2 + $0x10] ss:$8 sps:$4 sm:$0xff]   ;;  %101 = vst [vmem:[#allocation2 + $0x34] sm:$0x1] %v100_v32  ;;  %144 = vrot.lane.b32.xlu0 %v1797_v31, %s1714_s1 }
  0x3d   :  { %105 = vst [vmem:[#allocation2 + $0x3c] sm:$0x1] %v104_v33  ;;  %vm330_vm4 = vsmask.f32 3328  ;;  %146 = vrot.lane.b32.xlu1 %v1803_v34, %s1714_s1  ;;  %vm331_vm5 = vsmask.f32 7440 }
  0x3e   :  { %v1809_v35 = vld [vmem:[#allocation2 + $0x20] ss:$8 sps:$4 sm:$0xff]   ;;  %v315_v37 = vld [vmem:[#allocation2 + $0x4] sm:$0x1]  ;;  %v1811_v39 = vld [vmem:[#allocation2 + $0x30] ss:$8 sps:$4 sm:$0xff]  }
  0x3f   :  { %v314_v36 = vld [vmem:[#allocation2] sm:$0xf]  ;;  %v316_v38 = vld [vmem:[#allocation2 + $0x8] sm:$0xf]  ;;  %v317_v40 = vld [vmem:[#allocation2 + $0xc] sm:$0x1] }
  0x40   :  { %v334_v41 = vshrl.u32 %v314_v36, 16  ;;  %v337_v42 = vshll.u32 %v314_v36, 16  ;;  %v343_v43 = vshll.u32 %v315_v37, 16  ;;  %v348_v44 = vshrl.u32 %v316_v38, 16  ;;  %647 = vrot.lane.b32.xlu0 %v1797_v31, %s1715_s16  ;;  %v318_v47 = vld [vmem:[#allocation2 + $0x10] sm:$0xf]  ;;  %vm1821_vm6 = vmor %vm330_vm4, %vm331_vm5 }
  0x41   :  { %v351_v45 = vshll.u32 %v316_v38, 16  ;;  %v357_v46 = vshll.u32 %v317_v40, 16  ;;  %v319_v48 = vld [vmem:[#allocation2 + $0x14] sm:$0x1]  ;;  %649 = vrot.lane.b32.xlu1 %v1803_v34, %s1715_s16  ;;  %v320_v53 = vld [vmem:[#allocation2 + $0x18] sm:$0xf] }
  0x42   :  { %v336_v49 = vrot.slane %v334_v41, 4  ;;  %v339_v50 = vrot.slane %v337_v42, 5  ;;  %v345_v51 = vrot.slane %v343_v43, 5  ;;  %v350_v52 = vrot.slane %v348_v44, 4  ;;  %v321_v56 = vld [vmem:[#allocation2 + $0x1c] sm:$0x1] }
  0x43   :  { %v353_v54 = vrot.slane %v351_v45, 5  ;;  %v359_v55 = vrot.slane %v357_v46, 5  ;;  %v362_v57 = vshrl.u32 %v318_v47, 16  ;;  %v365_v58 = vshll.u32 %v318_v47, 16  ;;  %v322_v63 = vld [vmem:[#allocation2 + $0x20] sm:$0xf] }
  0x44   :  { %v340_v59 = vor.u32 %v339_v50, %v336_v49  ;;  %v371_v60 = vshll.u32 %v319_v48, 16  ;;  %v376_v61 = vshrl.u32 %v320_v53, 16  ;;  %v379_v62 = vshll.u32 %v320_v53, 16  ;;  %148 = vrot.lane.b32.xlu0 %v1809_v35, %s1714_s1  ;;  %v323_v6 = vld [vmem:[#allocation2 + $0x24] sm:$0x1]  ;;  %s1716_s17 = smov 112  }
  0x45   :  { %v354_v2 = vor.u32 %v353_v54, %v350_v52  ;;  %v364_v3 = vrot.slane %v362_v57, 4  ;;  %v367_v4 = vrot.slane %v365_v58, 5  ;;  %v385_v5 = vshll.u32 %v321_v56, 16  ;;  %150 = vrot.lane.b32.xlu1 %v1811_v39, %s1714_s1  ;;  %v324_v11 = vld [vmem:[#allocation2 + $0x28] sm:$0xf] }
  0x46   :  { %v341_v7 = vrot.slane %v340_v59, 4  ;;  %v373_v8 = vrot.slane %v371_v60, 5  ;;  %v378_v9 = vrot.slane %v376_v61, 4  ;;  %v381_v10 = vrot.slane %v379_v62, 5  ;;  %v325_v18 = vld [vmem:[#allocation2 + $0x2c] sm:$0x1] }
  0x47   :  { %v355_v12 = vrot.slane %v354_v2, 4  ;;  %v368_v13 = vor.u32 %v367_v4, %v364_v3  ;;  %v387_v14 = vrot.slane %v385_v5, 5  ;;  %v390_v15 = vshrl.u32 %v322_v63, 16  ;;  %v326_v25 = vld [vmem:[#allocation2 + $0x30] sm:$0xf] }
  0x48   :  { %v346_v16 = vsel %vm1821_vm6, %v341_v7, %v345_v51  ;;  %v382_v17 = vor.u32 %v381_v10, %v378_v9  ;;  %v393_v19 = vshll.u32 %v322_v63, 16  ;;  %v399_v20 = vshll.u32 %v323_v6, 16  ;;  %v327_v29 = vld [vmem:[#allocation2 + $0x34] sm:$0x1]  ;;  %v328_v30 = vld [vmem:[#allocation2 + $0x38] sm:$0xf] }
  0x49   :  { %v360_v21 = vsel %vm1821_vm6, %v355_v12, %v359_v55  ;;  %v369_v22 = vrot.slane %v368_v13, 4  ;;  %v392_v23 = vrot.slane %v390_v15, 4  ;;  %v404_v24 = vshrl.u32 %v324_v11, 16  ;;  %v329_v41 = vld [vmem:[#allocation2 + $0x3c] sm:$0x1] }
  0x4a   :  { %v1831_v26 = vcombine.low %v346_v16, %v360_v21  ;;  %v383_v27 = vrot.slane %v382_v17, 4  ;;  %v395_v28 = vrot.slane %v393_v19, 5  ;;  %v407_v36 = vshll.u32 %v324_v11, 16  ;;  %v106_v2 = vld [vmem:[#allocation6] sm:$0xf] }
  0x4b   :  { %v374_v32 = vsel %vm1821_vm6, %v369_v22, %v373_v8  ;;  %v406_v33 = vrot.slane %v404_v24, 4  ;;  %v413_v37 = vshll.u32 %v325_v18, 16  ;;  %v418_v42 = vshrl.u32 %v326_v25, 16  ;;  %109 = vst.msk [vmem:[#allocation2 + $0x40] sm:$0xf] %vm70_vm2, %v106_v2 }
  0x4c   :  { %745 = vrot.lane.b32.xlu0 %v1831_v26, %s1716_s17  ;;  %v388_v38 = vsel %vm1821_vm6, %v383_v27, %v387_v14  ;;  %v396_v40 = vor.u32 %v395_v28, %v392_v23  ;;  %v421_v43 = vshll.u32 %v326_v25, 16  ;;  %v401_v45 = vrot.slane %v399_v20, 5  ;;  %v1347_v5 = vld [vmem:[%s2040_s2 + $0x4] sm:$0xf]  ;;  %v1854_v6 = vld [vmem:[%s2040_s2 + $0x10] sm:$0xf] }
  0x4d   :  { %v1839_v44 = vcombine.low %v374_v32, %v388_v38  ;;  %v409_v46 = vrot.slane %v407_v36, 5  ;;  %v427_v47 = vshll.u32 %v327_v29, 16  ;;  %v420_v49 = vrot.slane %v418_v42, 4  ;;  %v121_v7 = vld [vmem:[%s2040_s2] sm:$0xf] }
  0x4e   :  { %v397_v48 = vrot.slane %v396_v40, 4  ;;  %v423_v50 = vrot.slane %v421_v43, 5  ;;  %v432_v51 = vshrl.u32 %v328_v30, 16  ;;  %v415_v53 = vrot.slane %v413_v37, 5  ;;  %v1379_v11 = vld [vmem:[%s2040_s2 + $0x14] sm:$0xf] }
  0x4f   :  { %747 = vrot.lane.b32.xlu1 %v1839_v44, %s1716_s17  ;;  %v410_v52 = vor.u32 %v409_v46, %v406_v33  ;;  %v435_v54 = vshll.u32 %v328_v30, 16  ;;  %v441_v55 = vshll.u32 %v329_v41, 16  ;;  %vm165_vm7 = vcmask 1043456   ;;  %v1877_v14 = vld [vmem:[#allocation2 + $0x8] ss:$8 sps:$4 sm:$0xff]  }
  0x50   :  { %v424_v56 = vor.u32 %v423_v50, %v420_v49  ;;  %v434_v57 = vrot.slane %v432_v51, 4  ;;  %v402_v58 = vsel %vm1821_vm6, %v397_v48, %v401_v45  ;;  %v429_v60 = vrot.slane %v427_v47, 5  ;;  %1609 = vmatprep.subr.msk.bf16.mxu1 %vm165_vm7, %v1347_v5  ;;  %1613 = vmatprep.subr.msk.bf16.mxu0 %vm165_vm7, %v1854_v6  ;;  %v1889_v17 = vld [vmem:[#allocation2 + $0x18] ss:$8 sps:$4 sm:$0xff]   ;;  %v1895_v18 = vld [vmem:[#allocation2 + $0x28] ss:$8 sps:$4 sm:$0xff]  }
  0x51   :  { %v411_v59 = vrot.slane %v410_v52, 4  ;;  %v437_v61 = vrot.slane %v435_v54, 5  ;;  %v443_v63 = vrot.slane %v441_v55, 5  ;;  %v167_v9 = vsel %vm165_vm7, %v1347_v5, 0  ;;  %v107_v20 = vld [vmem:[#allocation6 + $0x4] sm:$0x1] }
  0x52   :  { %v425_v62 = vrot.slane %v424_v56, 4  ;;  %v1867_v10 = vsel %vm165_vm7, %v1854_v6, 0  ;;  %1454 = vmatpush3.bf16.msra.mxu1 %v167_v9  ;;  %v1901_v19 = vld [vmem:[#allocation2 + $0x38] ss:$8 sps:$4 sm:$0xff]   ;;  %v110_v21 = vld [vmem:[#allocation2 + $0x44] sm:$0x1] }
  0x53   :  { %v416_v3 = vsel %vm1821_vm6, %v411_v59, %v415_v53  ;;  %v438_v4 = vor.u32 %v437_v61, %v434_v57  ;;  %1494 = vmatpush3.bf16.msra.mxu0 %v1867_v10  ;;  %1610 = vmatprep.subr.msk.bf16.mxu1 %vm165_vm7, %v121_v7  ;;  %v111_v22 = vsel %vm1773_vm3, %v107_v20, %v110_v21  ;;  %vm152_vm8 = vcmask 64512   ;;  %v1360_v27 = vld [vmem:[%s2040_s2 + $0x8] sm:$0xf]  ;;  %v1384_v30 = vld [vmem:[%s2040_s2 + $0x18] sm:$0xf] }
  0x54   :  { %v1859_v8 = vcombine.low %v402_v58, %v416_v3  ;;  %v430_v12 = vsel %vm1821_vm6, %v425_v62, %v429_v60  ;;  %1615 = vmatprep.subr.msk.bf16.mxu0 %vm165_vm7, %v1379_v11  ;;  %112 = vst [vmem:[#allocation2 + $0x44] sm:$0x1] %v111_v22  ;;  %v247_v24 = vsel %vm165_vm7, %v121_v7, 0  ;;  %v766_v29 = vsel %vm165_vm7, %v1379_v11, 0  ;;  %v1393_v41 = vld [vmem:[%s2040_s2 + $0x1c] sm:$0xf] }
  0x55   :  { %v439_v13 = vrot.slane %v438_v4, 4  ;;  %v472_v37 = vsel %vm165_vm7, %v1360_v27, 0  ;;  %v885_v38 = vsel %vm165_vm7, %v1384_v30, 0  ;;  %v1369_v42 = vld [vmem:[%s2040_s2 + $0xc] sm:$0xf]  ;;  %vm1319_vm9 = vcmask 60416  }
  0x56   :  { %749 = vrot.lane.b32.xlu0 %v1859_v8, %s1716_s17  ;;  %v1058_v45 = vld [vmem:[#allocation2 + $0x8] sm:$0xf]  ;;  %v1398_v48 = vld [vmem:[%s2040_s2 + $0x20] sm:$0xf]  ;;  %v1062_v54 = vld [vmem:[#allocation2 + $0x18] sm:$0xf] }
  0x57   :  { %v444_v15 = vsel %vm1821_vm6, %v439_v13, %v443_v63  ;;  %v1075_v49 = vshrl.u32 %v1058_v45, 16  ;;  %v1059_v56 = vld [vmem:[#allocation2 + $0xc] sm:$0x1]  ;;  %v1061_v60 = vld [vmem:[#allocation2 + $0x14] sm:$0x1]  ;;  %v1103_v62 = vshrl.u32 %v1062_v54, 16 }
  0x58   :  { %v1883_v16 = vcombine.low %v430_v12, %v444_v15  ;;  %v1064_v61 = vld [vmem:[#allocation2 + $0x20] sm:$0xf]  ;;  %v1084_v2 = vshll.u32 %v1059_v56, 16  ;;  %v1106_v3 = vshll.u32 %v1062_v54, 16  ;;  %v1066_v4 = vld [vmem:[#allocation2 + $0x28] sm:$0xf] }
  0x59   :  { %v1077_v52 = vrot.slane %v1075_v49, 4  ;;  %v1068_v5 = vld [vmem:[#allocation2 + $0x30] sm:$0xf]  ;;  %v1098_v7 = vshll.u32 %v1061_v60, 16  ;;  %v1120_v9 = vshll.u32 %v1064_v61, 16  ;;  %v1131_v12 = vshrl.u32 %v1066_v4, 16 }
  0x5a   :  { %751 = vrot.lane.b32.xlu1 %v1883_v16, %s1716_s17  ;;  %962 = vrot.lane.b32.xlu0 %v1877_v14, %s1714_s1  ;;  %v1134_v13 = vshll.u32 %v1066_v4, 16  ;;  %v1148_v15 = vshll.u32 %v1068_v5, 16  ;;  %v1105_v20 = vrot.slane %v1103_v62, 4  ;;  %v1108_v21 = vrot.slane %v1106_v3, 5  ;;  %v1071_v56 = vld [vmem:[#allocation2 + $0x3c] sm:$0x1] }
  0x5b   :  { %v1168_v4 = vshll.u32 %v1071_v56, 16 }
  0x5e   :  { %964 = vrot.lane.b32.xlu1 %v1889_v17, %s1714_s1  ;;  %549 = vrot.lane.b32.xlu0 %v1797_v31, %s1716_s17 }
  0x62   :  { %551 = vrot.lane.b32.xlu1 %v1803_v34, %s1716_s17  ;;  %966 = vrot.lane.b32.xlu0 %v1895_v18, %s1714_s1 }
  0x66   :  { %968 = vrot.lane.b32.xlu1 %v1901_v19, %s1714_s1  ;;  %553 = vrot.lane.b32.xlu0 %v1809_v35, %s1716_s17 }
  0x6a   :  { %555 = vrot.lane.b32.xlu1 %v1811_v39, %s1716_s17  ;;  %651 = vrot.lane.b32.xlu0 %v1809_v35, %s1715_s16 }
  0x6e   :  { %653 = vrot.lane.b32.xlu1 %v1811_v39, %s1715_s16 }
  0xae   :  { %v145_v23 = vpop.permute.xlu0 %144 }
  0xaf   :  { %v147_v25 = vpop.permute.xlu1 %146  ;;  %1455 = vmatprep.mubr.msk.bf16.mxu1 %vm152_vm8, %v145_v23  ;;  %v1063_v23 = vld [vmem:[#allocation2 + $0x1c] sm:$0x1] }
  0xb0   :  { %1456 = vmatmul.mubr.msk.bf16.vlgmr.msra.gmra.mrb[0].mxu1 %vm152_vm8, %v147_v25  ;;  %v1122_v25 = vrot.slane %v1120_v9, 5 }
  0xb1   :  { %1464 = vmatpush3.bf16.msra.mxu1 %v247_v24 }
  0xb2   :  { %v648_v28 = vpop.permute.xlu0 %647  ;;  %1611 = vmatprep.subr.msk.bf16.mxu1 %vm165_vm7, %v1360_v27  ;;  %v1213_v27 = vsel %vm165_vm7, %v1398_v48, 0 }
  0xb3   :  { %v650_v0 = vpop.permute.xlu1 %649  ;;  %1495 = vmatprep.mubr.msk.bf16.mxu0 %vm152_vm8, %v648_v28  ;;  %v1065_v28 = vld [vmem:[#allocation2 + $0x24] sm:$0x1] }
  0xb4   :  { %1496 = vmatmul.mubr.msk.bf16.vlgmr.msra.gmra.mrb[0].mxu0 %vm152_vm8, %v650_v0  ;;  %v1133_v0 = vrot.slane %v1131_v12, 4 }
  0xb5   :  { %1504 = vmatpush3.bf16.msra.mxu0 %v766_v29  ;;  %v1070_v29 = vld [vmem:[#allocation2 + $0x38] sm:$0xf] }
  0xb6   :  { %v149_v32 = vpop.permute.xlu0 %148  ;;  %1616 = vmatprep.subr.msk.bf16.mxu0 %vm165_vm7, %v1384_v30  ;;  %v1136_v30 = vrot.slane %v1134_v13, 5  ;;  %v1170_v13 = vrot.slane %v1168_v4, 5 }
  0xb7   :  { %v151_v33 = vpop.permute.xlu1 %150  ;;  %1459 = vmatprep.mubr.msk.bf16.mxu1 %vm152_vm8, %v149_v32 }
  0xb8   :  { %1460 = vmatmul.mubr.msk.bf16.gmra.mrb[4].mxu1 %vm152_vm8, %v151_v33  ;;  %v1150_v33 = vrot.slane %v1148_v15, 5 }
  0xb9   :  { %1465 = vmatprep.mubr.msk.bf16.mxu1 %vm152_vm8, %v1797_v31 }
  0xbe   :  { %v746_v36 = vpop.permute.xlu0 %745 }
  0xbf   :  { %1505 = vmatprep.mubr.msk.bf16.mxu0 %vm152_vm8, %v746_v36  ;;  %v1072_v36 = vld [vmem:[#allocation2 + $0x40] sm:$0xf] }
  0xc0   :  { %1466 = vmatmul.mubr.msk.bf16.vlgmr.msra.gmra.mrb[0].mxu1 %vm152_vm8, %v1803_v34 }
  0xc1   :  { %v748_v40 = vpop.permute.xlu1 %747  ;;  %1474 = vmatpush3.bf16.msra.mxu1 %v472_v37  ;;  %1469 = vmatprep.mubr.msk.bf16.mxu1 %vm152_vm8, %v1809_v35  ;;  %v570_v35 = vsel %vm165_vm7, %v1369_v42, 0  ;;  %v1109_v37 = vor.u32 %v1108_v21, %v1105_v20 }
  0xc2   :  { %1506 = vmatmul.mubr.msk.bf16.vlgmr.msra.gmra.mrb[0].mxu0 %vm152_vm8, %v748_v40  ;;  %1612 = vmatprep.subr.msk.bf16.mxu1 %vm165_vm7, %v1369_v42  ;;  %v1067_v40 = vld [vmem:[#allocation2 + $0x2c] sm:$0x1] }
  0xc3   :  { %1514 = vmatpush3.bf16.msra.mxu0 %v885_v38  ;;  %v1112_v38 = vshll.u32 %v1063_v23, 16  ;;  %v1140_v49 = vshll.u32 %v1067_v40, 16 }
  0xc4   :  { %1617 = vmatprep.subr.msk.bf16.mxu0 %vm165_vm7, %v1393_v41 }
  0xc8   :  { %v750_v31 = vpop.permute.xlu0 %749  ;;  %1470 = vmatmul.mubr.msk.bf16.gmra.mrb[4].mxu1 %vm152_vm8, %v1811_v39  ;;  %v1060_v39 = vld [vmem:[#allocation2 + $0x10] sm:$0xf] }
  0xc9   :  { %1509 = vmatprep.mubr.msk.bf16.mxu0 %vm152_vm8, %v750_v31  ;;  %1475 = vmatprep.mubr.msk.bf16.mxu1 %vm152_vm8, %v1831_v26  ;;  %v983_v26 = vsel %vm165_vm7, %v1393_v41, 0  ;;  %v1089_v50 = vshrl.u32 %v1060_v39, 16  ;;  %v1092_v51 = vshll.u32 %v1060_v39, 16  ;;  %v1069_v41 = vld [vmem:[#allocation2 + $0x34] sm:$0x1]  ;;  %v1173_v39 = vshrl.u32 %v1072_v36, 16 }
  0xcb   :  { %v1091_v57 = vrot.slane %v1089_v50, 4  ;;  %v1094_v58 = vrot.slane %v1092_v51, 5  ;;  %v1110_v50 = vrot.slane %v1109_v37, 4 }
  0xcc   :  { %v752_v34 = vpop.permute.xlu1 %751  ;;  %v963_v43 = vpop.permute.xlu0 %962 }
  0xcd   :  { %1510 = vmatmul.mubr.msk.bf16.gmra.mrb[4].mxu0 %vm152_vm8, %v752_v34  ;;  %v1126_v34 = vshll.u32 %v1065_v28, 16  ;;  %v1407_v28 = vld [vmem:[%s2041_s3] ss:$0 sm:$0xff]  ;;  %s1717_s3 = smov [#allocation8]  }
  0xce   :  { %1515 = vmatprep.mubr.msk.bf16.mxu0 %vm152_vm8, %v1877_v14  ;;  %v1145_v14 = vshrl.u32 %v1068_v5, 16  ;;  %s1333_s13 = sshll.u32 %s1717_s3, 4  ;;  %s1334_s13 = int_to_ptr.vmem [resolvable:$true] %s1333_s13 }
  0xcf   :  { %v1128_v54 = vrot.slane %v1126_v34, 5  ;;  %s1682_s14 = scalar_lea.vmem %s1334_s13, 512  ;;  %p1687_p9 = scmp.lt.s32.totalorder %s1334_s13, %s1334_s13 }
  0xd0   :  { %1476 = vmatmul.mubr.msk.bf16.vlgmr.msra.gmra.mrb[0].mxu1 %vm152_vm8, %v1839_v44  ;;  %v550_v46 = vpop.permute.xlu0 %549  ;;  %v1965_v47 = vpop.permute.xlu1 %964  ;;  %v1078_v44 = vshll.u32 %v1058_v45, 16  ;;  %v1147_v32 = vrot.slane %v1145_v14, 4  ;;  %v1162_v45 = vshll.u32 %v1070_v29, 16  ;;  %p1683_p8 = scmp.ne.s32.totalorder %s1334_s13, %s1682_s14  ;;  %p1688_p10 = scmp.lt.s32.totalorder %s1682_s14, %s1682_s14 }
  0xd1   :  { %1484 = vmatpush3.bf16.msra.mxu1 %v570_v35  ;;  %1479 = vmatprep.mubr.msk.bf16.mxu1 %vm152_vm8, %v1859_v8  ;;  %v1117_v8 = vshrl.u32 %v1064_v61, 16  ;;  %v1159_v35 = vshrl.u32 %v1070_v29, 16  ;;  %v1142_v61 = vrot.slane %v1140_v49, 5 }
  0xd2   :  { %1614 = vmatprep.subr.msk.bf16.mxu1 %vm165_vm7, %v1854_v6  ;;  %v1080_v53 = vrot.slane %v1078_v44, 5  ;;  %v1095_v6 = vor.u32 %v1094_v58, %v1091_v57  ;;  %v1154_v44 = vshll.u32 %v1069_v41, 16  ;;  %v1164_v57 = vrot.slane %v1162_v45, 5  ;;  %p1689_p11 = por %p1688_p10, %p1687_p9 }
  0xd3   :  { %v1119_v24 = vrot.slane %v1117_v8, 4  ;;  %v1175_v58 = vrot.slane %v1173_v39, 4 }
  0xd4   :  { %v967_v55 = vpop.permute.xlu0 %966  ;;  %v552_v59 = vpop.permute.xlu1 %551  ;;  %v1081_v63 = vor.u32 %v1080_v53, %v1077_v52  ;;  %v1096_v22 = vrot.slane %v1095_v6, 4  ;;  %v1114_v52 = vrot.slane %v1112_v38, 5  ;;  %p1690_p12 = pnand %p1689_p11, %p1683_p8 }
  0xd5   :  { %1516 = vmatmul.mubr.msk.bf16.vlgmr.msra.gmra.mrb[0].mxu0 %vm152_vm8, %v1889_v17  ;;  %v1123_v31 = vor.u32 %v1122_v25, %v1119_v24 }
  0xd6   :  { %1524 = vmatpush3.bf16.msra.mxu0 %v983_v26  ;;  %1519 = vmatprep.mubr.msk.bf16.mxu0 %vm152_vm8, %v1895_v18  ;;  %v1082_v17 = vrot.slane %v1081_v63, 4  ;;  %v1086_v18 = vrot.slane %v1084_v2, 5  ;;  %v1176_v26 = vshll.u32 %v1072_v36, 16  ;;  %v1156_v63 = vrot.slane %v1154_v44, 5  ;;  %v1073_v2 = vld [vmem:[#allocation2 + $0x44] sm:$0x1] }
  0xd7   :  { %1618 = vmatprep.subr.msk.bf16.mxu0 %vm165_vm7, %v1398_v48  ;;  %v1137_v48 = vor.u32 %v1136_v30, %v1133_v0  ;;  %v1124_v53 = vrot.slane %v1123_v31, 4  ;;  %v1115_v3 = vsel %vm1821_vm6, %v1110_v50, %v1114_v52  ;;  %v1182_v8 = vshll.u32 %v1073_v2, 16 }
  0xd8   :  { %1480 = vmatmul.mubr.msk.bf16.gmra.mrb[4].mxu1 %vm152_vm8, %v1883_v16  ;;  %v554_v11 = vpop.permute.xlu0 %553  ;;  %v969_v16 = vpop.permute.xlu1 %968  ;;  %v1087_v42 = vsel %vm1821_vm6, %v1082_v17, %v1086_v18 }
  0xd9   :  { %1485 = vmatprep.mubr.msk.bf16.mxu1 %vm152_vm8, %v550_v46  ;;  %v1138_v60 = vrot.slane %v1137_v48, 4  ;;  %v1129_v5 = vsel %vm1821_vm6, %v1124_v53, %v1128_v54  ;;  %v1184_v18 = vrot.slane %v1182_v8, 5 }
  0xda   :  { %v1400_v12 = vcombine.low %v1115_v3, %v1129_v5 }
  0xdb   :  { %v1143_v9 = vsel %vm1821_vm6, %v1138_v60, %v1142_v61 }
  0xdc   :  { %v652_v46 = vpop.permute.xlu0 %651 }
  0xdd   :  { %1520 = vmatmul.mubr.msk.bf16.gmra.mrb[4].mxu0 %vm152_vm8, %v1901_v19  ;;  %v1100_v19 = vrot.slane %v1098_v7, 5 }
  0xde   :  { %1525 = vmatprep.mubr.msk.bf16.mxu0 %vm152_vm8, %v963_v43  ;;  %v556_v43 = vpop.permute.xlu1 %555 }
  0xe0   :  { %1486 = vmatmul.mubr.msk.bf16.vlgmr.msra.gmra.mrb[0].mxu1 %vm152_vm8, %v552_v59  ;;  %v1178_v59 = vrot.slane %v1176_v26, 5 }
  0xe1   :  { %1544 = vmatpush3.bf16.msra.mxu1 %v1867_v10  ;;  %1489 = vmatprep.mubr.msk.bf16.mxu1 %vm152_vm8, %v554_v11  ;;  %v1101_v10 = vsel %vm1821_vm6, %v1096_v22, %v1100_v19 }
  0xe2   :  { %v1399_v51 = vcombine.low %v1087_v42, %v1101_v10  ;;  %v1179_v7 = vor.u32 %v1178_v59, %v1175_v58  ;;  %v654_v14 = vpop.permute.xlu1 %653 }
  0xe4   :  { %v1180_v17 = vrot.slane %v1179_v7, 4 }
  0xe5   :  { %1526 = vmatmul.mubr.msk.bf16.vlgmr.msra.gmra.mrb[0].mxu0 %vm152_vm8, %v1965_v47  ;;  %v1151_v47 = vor.u32 %v1150_v33, %v1147_v32 }
  0xe6   :  { %1534 = vmatpush3.bf16.msra.mxu0 %v1213_v27  ;;  %1529 = vmatprep.mubr.msk.bf16.mxu0 %vm152_vm8, %v967_v55  ;;  %v1161_v55 = vrot.slane %v1159_v35, 4  ;;  %v1185_v21 = vsel %vm1821_vm6, %v1180_v17, %v1184_v18 }
  0xe7   :  { %v1152_v62 = vrot.slane %v1151_v47, 4 }
  0xe8   :  { %1490 = vmatmul.mubr.msk.bf16.gmra.mrb[4].mxu1 %vm152_vm8, %v556_v43  ;;  %v1165_v6 = vor.u32 %v1164_v57, %v1161_v55 }
  0xe9   :  { %1499 = vmatprep.mubr.msk.bf16.mxu1 %vm152_vm8, %v652_v46  ;;  %v1157_v11 = vsel %vm1821_vm6, %v1152_v62, %v1156_v63 }
  0xea   :  { %v1401_v15 = vcombine.low %v1143_v9, %v1157_v11 }
  0xed   :  { %1530 = vmatmul.mubr.msk.bf16.gmra.mrb[4].mxu0 %vm152_vm8, %v969_v16  ;;  %v1166_v16 = vrot.slane %v1165_v6, 4 }
  0xee   :  { %1535 = vmatprep.mubr.msk.bf16.mxu0 %vm152_vm8, %v1399_v51 }
  0xef   :  { %v1171_v20 = vsel %vm1821_vm6, %v1166_v16, %v1170_v13 }
  0xf0   :  { %v1402_v22 = vcombine.low %v1171_v20, %v1185_v21 }
  0xf4   :  { %1500 = vmatmul.mubr.msk.bf16.vlgmr.msra.gmra.mrb[4].mxu1 %vm152_vm8, %v654_v14 }
  0xf5   :  { %1536 = vmatmul.mubr.msk.bf16.vlgmr.msra.gmra.mrb[0].mxu0 %vm152_vm8, %v1400_v12 }
  0xf6   :  { %1539 = vmatprep.mubr.msk.bf16.mxu0 %vm152_vm8, %v1401_v15 }
  0xfd   :  { %1540 = vmatmul.mubr.msk.bf16.gmra.mrb[4].mxu0 %vm152_vm8, %v1402_v22 }
 0x1b3   :  { %v1487_v19 = vpop.f32.mrb[0].mxu1 }
 0x1b4   :  { %v606_v23 = vpop.f32.mrb[1].mxu1 }
 0x1b5   :  { %v1488_v24 = vpop.f32.mrb[2].mxu1 }
 0x1b6   :  { %v609_v25 = vpop.f32.mrb[3].mxu1 }
 0x1c7   :  { %v1501_v29 = vpop.f32.mrb[4].mxu1 }
 0x1c8   :  { %v1537_v27 = vpop.f32.mrb[0].mxu0  ;;  %v720_v32 = vpop.f32.mrb[5].mxu1 }
 0x1c9   :  { %v1545_v0 = vadd.f32 %v1537_v27, %v1487_v19  ;;  %v1249_v30 = vpop.f32.mrb[1].mxu0  ;;  %v1502_v1 = vpop.f32.mrb[6].mxu1 }
 0x1ca   :  { %v1546_v33 = vadd.f32 %v1249_v30, %v606_v23  ;;  %v1538_v36 = vpop.f32.mrb[2].mxu0  ;;  %v723_v41 = vpop.f32.mrb[7].mxu1 }
 0x1cb   :  { %v1297_v37 = vadd.f32 %v1545_v0, %v1407_v28  ;;  %v1547_v38 = vadd.f32 %v1538_v36, %v1488_v24  ;;  %v1252_v40 = vpop.f32.mrb[3].mxu0 }
 0x1cc   :  { %v1295_v42 = vadd.f32 %v1546_v33, %v1407_v28  ;;  %v1548_v10 = vadd.f32 %v1252_v40, %v609_v25 }
 0x1cd   :  { %v1305_v31 = vmax.f32 %v1297_v37, 0.0  ;;  %v1298_v34 = vadd.f32 %v1547_v38, %v1407_v28 }
 0x1ce   :  { %v1303_v43 = vmax.f32 %v1295_v42, 0.0  ;;  %v1296_v35 = vadd.f32 %v1548_v10, %v1407_v28 }
 0x1cf   :  { %v1313_v45 = vpack.c.bf16 %v1305_v31, %v1305_v31  ;;  %v1306_v39 = vmax.f32 %v1298_v34, 0.0 }
 0x1d0   :  { %v1311_v26 = vpack.c.bf16 %v1303_v43, %v1303_v43  ;;  %v1304_v46 = vmax.f32 %v1296_v35, 0.0  ;;  %v1541_v48 = vpop.f32.mrb[4].mxu0 }
 0x1d1   :  { %1322 = vst.msk [vmem:[#allocation8 + $0x8] sm:$0xf] %vm1319_vm9, %v1313_v45  ;;  %v1314_v49 = vpack.c.bf16 %v1306_v39, %v1306_v39  ;;  %v1549_v47 = vadd.f32 %v1541_v48, %v1501_v29  ;;  %v1265_v44 = vpop.f32.mrb[5].mxu0 }
 0x1d2   :  { %1320 = vst.msk [vmem:[#allocation8] sm:$0xf] %vm1319_vm9, %v1311_v26  ;;  %v1312_v50 = vpack.c.bf16 %v1304_v46, %v1304_v46  ;;  %v1550_v51 = vadd.f32 %v1265_v44, %v720_v32  ;;  %v1542_v52 = vpop.f32.mrb[6].mxu0 }
 0x1d3   :  { %1323 = vst.msk [vmem:[#allocation8 + $0xc] sm:$0xf] %vm1319_vm9, %v1314_v49  ;;  %v1301_v53 = vadd.f32 %v1549_v47, %v1407_v28  ;;  %v1551_v54 = vadd.f32 %v1542_v52, %v1502_v1  ;;  %v1268_v56 = vpop.f32.mrb[7].mxu0 }
 0x1d4   :  { %1321 = vst.msk [vmem:[#allocation8 + $0x4] sm:$0xf] %vm1319_vm9, %v1312_v50  ;;  %v1299_v55 = vadd.f32 %v1550_v51, %v1407_v28  ;;  %v1552_v57 = vadd.f32 %v1268_v56, %v723_v41 }
 0x1d5   :  { %v1309_v58 = vmax.f32 %v1301_v53, 0.0  ;;  %v1302_v59 = vadd.f32 %v1551_v54, %v1407_v28 }
 0x1d6   :  { %v1307_v60 = vmax.f32 %v1299_v55, 0.0  ;;  %v1300_v61 = vadd.f32 %v1552_v57, %v1407_v28 }
 0x1d7   :  { %v1317_v62 = vpack.c.bf16 %v1309_v58, %v1309_v58  ;;  %v1310_v63 = vmax.f32 %v1302_v59, 0.0 }
 0x1d8   :  { %v1315_v2 = vpack.c.bf16 %v1307_v60, %v1307_v60  ;;  %v1308_v3 = vmax.f32 %v1300_v61, 0.0 }
 0x1d9   :  { %1326 = vst.msk [vmem:[#allocation8 + $0x18] sm:$0xf] %vm1319_vm9, %v1317_v62  ;;  %v1318_v4 = vpack.c.bf16 %v1310_v63, %v1310_v63 }
 0x1da   :  { %1324 = vst.msk [vmem:[#allocation8 + $0x10] sm:$0xf] %vm1319_vm9, %v1315_v2  ;;  %v1316_v5 = vpack.c.bf16 %v1308_v3, %v1308_v3 }
 0x1db   :  { %1327 = vst.msk [vmem:[#allocation8 + $0x1c] sm:$0xf] %vm1319_vm9, %v1318_v4 }
 0x1dc   :  { %1325 = vst.msk [vmem:[#allocation8 + $0x14] sm:$0xf] %vm1319_vm9, %v1316_v5 }
 0x1dd   :  { %1693 = shalt.err (!%p1690_p12)
}
 0x1de   :  { %s1694_s1 = scalar_lea.hbm %s2042_s4, 512 }
 0x1df   :  { %p1695_p13 = scmp.ne.s32.totalorder %s2042_s4, %s1694_s1  ;;  %p1698_p0 = scmp.lt.u32.totalorder %s1694_s1, %s2042_s4 }
 0x1e1   :  { %p1700_p1 = pnand %p1698_p0, %p1695_p13 }
 0x1e3   :  { %1703 = shalt.err (!%p1700_p1)
}
 0x1e4   :  { %1339 = dma.vmem_to_hbm [thread:$0]  %s1334_s13, 512, %s2042_s4, [#allocation5], %s1711_s28, %s1711_s28, %s1712_s29  }
 0x1e5   :  { %1708 = dma.done.wait [#allocation5], 512  }
 0x1e6   :  { %1709 = vsyncadd [#allocation5], 4294966784 }
 0x1e7   :  { %1343 = vsyncpa [#allocation4], 1 }
 0x1e8   :  { %1344 = vsyncpa [#allocation7], 1 }
 0x1e9   :  { %1345 = vsyncpa [#allocation5], 1 }

</bundles_post_ra>
